<compile_context>
chip_gen: v7x
topology: tpu7x:2x2x1
jax: 0.10.0
libtpu: 0.0.40
codegen_flags: <defaults>
</compile_context>

<pallas_src>
import jax
import jax.numpy as jnp
from jax.experimental import pallas as pl
from jax.experimental.pallas import tpu as pltpu

DEFAULT_VGG_MEAN = (0.485, 0.456, 0.406)
DEFAULT_VGG_STD = (0.229, 0.224, 0.225)


def _vgg_proj_kernel(x_ref, mean_ref, inv_ref, o_ref):
    # x_ref/o_ref: (tm, tl) VMEM tile; mean_ref/inv_ref: (tm, 1) per-row params.
    x = x_ref[...].astype(jnp.float32)
    o_ref[...] = ((x - mean_ref[...]) * inv_ref[...]).astype(o_ref.dtype)


def _pick_tile(total, unit, target):
    """Largest multiple of `unit` that divides `total` and is <= `target`.
    Falls back to the full dimension if `total` is not a multiple of `unit`
    (full-extent blocks are always legal)."""
    if total % unit != 0:
        return total
    best = unit
    t = unit
    limit = min(total, max(unit, target))
    while t <= limit:
        if total % t == 0:
            best = t
        t += unit
    return best


def vgg_projection(x, mean=DEFAULT_VGG_MEAN, std=DEFAULT_VGG_STD):
    """(x - mean[c]) / std[c] per channel, NCHW input (VGG preprocessing)."""
    N, C, H, W = x.shape
    mean_arr = jnp.asarray(mean, dtype=jnp.float32)
    std_arr = jnp.asarray(std, dtype=jnp.float32)
    assert mean_arr.shape == (C,) and std_arr.shape == (C,)
    inv_std = 1.0 / std_arr  # multiply instead of divide inside the kernel

    # Flatten to a lane-dense 2-D problem: rows = (n, c) planes, cols = H*W.
    R, L = N * C, H * W
    x2 = x.reshape(R, L)
    # Row r of x2 corresponds to channel r % C (C is the inner flatten axis),
    # so the per-row parameter vectors are just the channel params tiled N times.
    mean_rows = jnp.tile(mean_arr, (N,)).reshape(R, 1)
    inv_rows = jnp.tile(inv_std, (N,)).reshape(R, 1)

    # Sublane tile: largest multiple of 8 dividing R, up to 256 rows.
    tm = _pick_tile(R, 8, 256)
    # Lane tile: aim for ~2 MiB f32 tiles given tm (roofline plateau), but at
    # least a few vregs wide; cap so double-buffered in+out stays well under
    # the default scoped-VMEM limit on v5e/v6e/v7x.
    target_bytes = 2 * 1024 * 1024
    target_tl = max(512, target_bytes // (4 * tm))
    target_tl = min(target_tl, 16384)
    tl = _pick_tile(L, 128, target_tl)
    grid = (R // tm, L // tl)

    out2 = pl.pallas_call(
        _vgg_proj_kernel,
        out_shape=jax.ShapeDtypeStruct((R, L), x.dtype),
        grid=grid,
        in_specs=[
            pl.BlockSpec((tm, tl), lambda i, j: (i, j)),
            pl.BlockSpec((tm, 1), lambda i, j: (i, 0)),
            pl.BlockSpec((tm, 1), lambda i, j: (i, 0)),
        ],
        out_specs=pl.BlockSpec((tm, tl), lambda i, j: (i, j)),
        compiler_params=pltpu.CompilerParams(
            dimension_semantics=("parallel", "parallel")
        ),
    )(x2, mean_rows, inv_rows)

    return out2.reshape(N, C, H, W)


if __name__ == "__main__":
    key = jax.random.PRNGKey(0)
    # VGG projection operates on RGB images: batch=2, channels=3, spatial=16.
    x = jax.random.normal(key, (2, 3, 16, 16), dtype=jnp.float32)

    out = vgg_projection(x)
    out = jax.block_until_ready(out)

    # Reference in plain JAX (divide form, matching the PyTorch module).
    mean = jnp.asarray(DEFAULT_VGG_MEAN, dtype=jnp.float32).reshape(1, 3, 1, 1)
    std = jnp.asarray(DEFAULT_VGG_STD, dtype=jnp.float32).reshape(1, 3, 1, 1)
    ref = (x - mean) / std

    assert out.shape == x.shape and out.dtype == x.dtype
    # Reciprocal-multiply vs divide differs by ~1 ulp -> slightly looser tol.
    assert jnp.allclose(out, ref, atol=1e-5, rtol=1e-5)
    print("KERNEL_OK")
</pallas_src>

<mosaic_0001>
module attributes {stable_mosaic.version = 11 : i64} {
  func.func @_vgg_proj_kernel(%arg0: i32, %arg1: i32, %arg2: memref<6x256xf32, #tpu.memory_space<vmem>>, %arg3: memref<6x1xf32, #tpu.memory_space<vmem>>, %arg4: memref<6x1xf32, #tpu.memory_space<vmem>>, %arg5: memref<6x256xf32, #tpu.memory_space<vmem>>) attributes {dimension_semantics = [#tpu.dimension_semantics<parallel>, #tpu.dimension_semantics<parallel>], iteration_bounds = array<i64: 1, 1>, scalar_prefetch = 0 : i64, scratch_operands = 0 : i64, tpu.core_type = #tpu.core_type<tc>, window_params = [{transform_indices = @transform_0, window_bounds = array<i64: 6, 256>}, {transform_indices = @transform_1, window_bounds = array<i64: 6, 1>}, {transform_indices = @transform_2, window_bounds = array<i64: 6, 1>}, {transform_indices = @transform_3, window_bounds = array<i64: 6, 256>}]} {
    %c0 = arith.constant 0 : index
    %c0_0 = arith.constant 0 : index
    %0 = vector.load %arg2[%c0, %c0_0] : memref<6x256xf32, #tpu.memory_space<vmem>>, vector<6x256xf32>
    %c0_1 = arith.constant 0 : index
    %c0_2 = arith.constant 0 : index
    %1 = vector.load %arg3[%c0_1, %c0_2] : memref<6x1xf32, #tpu.memory_space<vmem>>, vector<6x1xf32>
    %2 = vector.broadcast %1 : vector<6x1xf32> to vector<6x256xf32>
    %3 = arith.subf %0, %2 : vector<6x256xf32>
    %c0_3 = arith.constant 0 : index
    %c0_4 = arith.constant 0 : index
    %4 = vector.load %arg4[%c0_3, %c0_4] : memref<6x1xf32, #tpu.memory_space<vmem>>, vector<6x1xf32>
    %5 = vector.broadcast %4 : vector<6x1xf32> to vector<6x256xf32>
    %6 = arith.mulf %3, %5 : vector<6x256xf32>
    %c0_5 = arith.constant 0 : index
    %c0_6 = arith.constant 0 : index
    %7 = vector.load %arg5[%c0_5, %c0_6] : memref<6x256xf32, #tpu.memory_space<vmem>>, vector<6x256xf32>
    tpu.vector_store %arg5[%c0_5, %c0_6], %6 {strides = array<i32>} : memref<6x256xf32, #tpu.memory_space<vmem>>, vector<6x256xf32>,
    return
  }
  func.func @transform_0(%arg0: i32, %arg1: i32) -> (i32, i32) {
    %c0_i32 = arith.constant 0 : i32
    return %arg0, %arg1 : i32, i32
  }
  func.func @transform_1(%arg0: i32, %arg1: i32) -> (i32, i32) {
    %c0_i32 = arith.constant 0 : i32
    %c0_i32_0 = arith.constant 0 : i32
    return %arg0, %c0_i32 : i32, i32
  }
  func.func @transform_2(%arg0: i32, %arg1: i32) -> (i32, i32) {
    %c0_i32 = arith.constant 0 : i32
    %c0_i32_0 = arith.constant 0 : i32
    return %arg0, %c0_i32 : i32, i32
  }
  func.func @transform_3(%arg0: i32, %arg1: i32) -> (i32, i32) {
    %c0_i32 = arith.constant 0 : i32
    return %arg0, %arg1 : i32, i32
  }
}

</mosaic_0001>

<bundles_post_ra>
// kernel: tpu_custom_call.1
= control target key start
LH: loop header
LB: loop body
LE: loop exit
PB: predicated region body
PF: predicated region fallthrough
CT: control target
= control target key end

     0   :  { %v76_v1 = vmov 0   ;;  %s122_s0 = inlined_call_operand.vmem [shape: f32[6,256], index: 0, kind: input, shape index: {}]   ;;  %s123_s1 = inlined_call_operand.vmem [shape: f32[6,1], index: 1, kind: input, shape index: {}]   ;;  %s124_s2 = inlined_call_operand.vmem [shape: f32[6,1], index: 2, kind: input, shape index: {}]   ;;  %s125_s3 = inlined_call_operand.hbm [shape: f32[6,256], index: 3, kind: output, shape index: {}]  }
   0x1   :  { %v17_v0 = vld [vmem:[%s123_s1] sm:$0x3f]  ;;  %51 = vset.pattern.permute.xlu0 %v76_v1 }
   0x2   :  { %8 = vsyncpa [#allocation3], 0  ;;  %20 = vperm.xlu0 %51, %v17_v0   ;;  %v25_v2 = vld [vmem:[%s124_s2] sm:$0x3f]  ;;  %v16_v5 = vld [vmem:[%s122_s0 + $0x8] sm:$0x3f] }
   0x3   :  { %v15_v4 = vld [vmem:[%s122_s0] sm:$0x3f]  ;;  %s77_s20 = smov [#allocation2]  }
   0x4   :  { %s41_s1 = sshll.u32 %s77_s20, 4  ;;  %s42_s1 = int_to_ptr.vmem [resolvable:$true] %s41_s1 }
   0x5   :  { %s52_s2 = scalar_lea.vmem %s42_s1, 256  ;;  %p57_p1 = scmp.lt.s32.totalorder %s42_s1, %s42_s1 }
   0x6   :  { %28 = vperm.xlu0 %51, %v25_v2   ;;  %p53_p0 = scmp.ne.s32.totalorder %s42_s1, %s52_s2  ;;  %p58_p2 = scmp.lt.s32.totalorder %s52_s2, %s52_s2 }
   0x8   :  { %p59_p3 = por %p58_p2, %p57_p1 }
   0xa   :  { %p60_p4 = pnand %p59_p3, %p53_p0 }
  0x81   :  { %v21_v3 = vpop.permute.xlu0 %20 }
  0x82   :  { %v23_v6 = vsub.f32 %v15_v4, %v21_v3  ;;  %v24_v7 = vsub.f32 %v16_v5, %v21_v3 }
  0x85   :  { %v29_v8 = vpop.permute.xlu0 %28 }
  0x86   :  { %v31_v9 = vmul.f32 %v29_v8, %v23_v6  ;;  %v32_v10 = vmul.f32 %v29_v8, %v24_v7 }
  0x88   :  { %33 = vst [vmem:[#allocation2] sm:$0x3f] %v31_v9  ;;  %34 = vst [vmem:[#allocation2 + $0x8] sm:$0x3f] %v32_v10 }
  0x89   :  { %63 = shalt.err (!%p60_p4)
}
  0x8a   :  { %s64_s0 = scalar_lea.hbm %s125_s3, 256 }
  0x8b   :  { %p65_p5 = scmp.ne.s32.totalorder %s125_s3, %s64_s0  ;;  %p68_p6 = scmp.lt.u32.totalorder %s64_s0, %s125_s3 }
  0x8d   :  { %p70_p7 = pnand %p68_p6, %p65_p5 }
  0x8f   :  { %73 = shalt.err (!%p70_p7)
}
  0x90   :  { %44 = dma.vmem_to_hbm [thread:$0]  %s42_s1, 256, %s125_s3, [#allocation3]  }
  0x91   :  { %74 = dma.done.wait [#allocation3], 256  }
  0x92   :  { %75 = vsyncadd [#allocation3], 4294967040 }
  0x93   :  { %48 = vsyncpa [#allocation3], 1 }

</bundles_post_ra>
